<compile_context>
chip_gen: v5e
topology: v5e:2x2
jax: 0.10.0
libtpu: 0.0.40
codegen_flags: <defaults>
</compile_context>

<pallas_src>
import jax
import jax.numpy as jnp
from jax.experimental import pallas as pl
from jax.experimental.pallas import tpu as pltpu


_LANE = 128
_TARGET_BLOCK_BYTES = 4 << 20    # ~4 MiB per block -> ~16 MiB double-buffered in+out
_MIN_SPLIT_BYTES = 1 << 20       # only split a single-block kernel if halves >= 1 MiB
_VMEM_LIMIT_BYTES = 32 << 20     # raise v5e's 16 MiB default; matches v6e/v7x default
_MAX_LANES = 2048


def _choose_lanes(n):
    """Largest lane width that divides the per-sample element count n."""
    # Prefer a multiple of 128 (lane-dense, unmasked vst) up to _MAX_LANES.
    lanes = _MAX_LANES
    while lanes >= _LANE:
        if n % lanes == 0:
            return lanes
        lanes -= _LANE
    # No multiple-of-128 divisor: largest divisor <= _MAX_LANES.  Rows still align
    # with sample boundaries (lanes | n), only the padded lane tail is masked.
    best = 1
    d = 1
    while d * d <= n:
        if n % d == 0:
            for c in (d, n // d):
                if c <= _MAX_LANES and c > best:
                    best = c
        d += 1
    return best


def _sublane_granularity(itemsize):
    """Packed sublane granularity: 8 rows for 4-byte, 16 for 2-byte, 32 for 1-byte."""
    return 8 * max(1, 4 // itemsize)


def _choose_rows_per_block(rows, lanes, itemsize):
    gran = _sublane_granularity(itemsize)
    lanes_padded = ((lanes + _LANE - 1) // _LANE) * _LANE
    row_bytes = lanes_padded * itemsize

    rb = max(gran, (_TARGET_BLOCK_BYTES // row_bytes) // gran * gran)
    if rb >= rows:
        total_bytes = rows * row_bytes
        # Single block would cover everything: split in two for megacore (v7x) only
        # if each half is still comfortably larger than the per-step overhead.
        if rows >= 2 * gran and total_bytes // 2 >= _MIN_SPLIT_BYTES:
            half = (rows + 1) // 2
            rb = min(rows, ((half + gran - 1) // gran) * gran)
        else:
            return rows                           # full extent -> always legal

    # Prefer an rb that divides rows evenly (no masked trailing block).
    lo = max(gran, rb - 8 * gran)
    cand = rb
    while cand >= lo:
        if rows % cand == 0:
            return cand
        cand -= gran
    return rb


def _dropconnect_kernel(scale_ref, x_ref, o_ref):
    # scale_ref: VMEM (RB, 1) per-row scale (f32, or bf16 for bf16 inputs)
    # x_ref/o_ref: VMEM (RB, LANES) tile spanning one or more batch samples
    o_ref[...] = (x_ref[...] * scale_ref[...]).astype(o_ref.dtype)


def dropconnect(x, rand_per_batch, ratio, *, training=True):
    """x: [B, C, H, W] (NCHW). rand_per_batch: [B] float32 uniform [0,1)."""
    if not training:
        return x
    keep = 1.0 - float(ratio)
    if keep <= 0.0:
        raise ValueError("DropConnect requires ratio < 1.0 (keep probability > 0).")

    B, C, H, W = x.shape
    n = C * H * W

    # Per-batch scale = floor(keep + u) / keep, computed once in f32 (cheap glue).
    scale_b = jnp.floor(keep + rand_per_batch.astype(jnp.float32)) / jnp.float32(keep)

    # Multiply in bf16 for bf16 inputs (halves vreg traffic on v6e/v7x), f32 otherwise.
    compute_dtype = jnp.bfloat16 if x.dtype == jnp.bfloat16 else jnp.float32
    scale_b = scale_b.astype(compute_dtype)

    lanes = _choose_lanes(n)
    rows_per_sample = n // lanes
    rows = B * rows_per_sample
    itemsize = jnp.dtype(x.dtype).itemsize
    rb = _choose_rows_per_block(rows, lanes, itemsize)

    x2 = x.reshape(rows, lanes)                              # contiguous -> free view
    scale_rows = jnp.repeat(scale_b, rows_per_sample).reshape(rows, 1)

    grid = (pl.cdiv(rows, rb),)
    out2 = pl.pallas_call(
        _dropconnect_kernel,
        out_shape=jax.ShapeDtypeStruct((rows, lanes), x.dtype),
        grid=grid,
        in_specs=[
            pl.BlockSpec((rb, 1), lambda r: (r, 0)),          # per-row scale (tiny)
            pl.BlockSpec((rb, lanes), lambda r: (r, 0)),      # x tile
        ],
        out_specs=pl.BlockSpec((rb, lanes), lambda r: (r, 0)),
        compiler_params=pltpu.CompilerParams(
            dimension_semantics=("parallel",),
            vmem_limit_bytes=_VMEM_LIMIT_BYTES,
        ),
    )(scale_rows, x2)

    return out2.reshape(B, C, H, W)


def dropconnect_ref(x, rand_per_batch, ratio):
    """Pure-JAX reference mirroring the PyTorch forward (computed in f32)."""
    keep = 1.0 - ratio
    mask = jnp.floor(keep + rand_per_batch.astype(jnp.float32)).reshape(-1, 1, 1, 1)
    return x.astype(jnp.float32) / keep * mask


if __name__ == "__main__":
    key = jax.random.PRNGKey(0)
    kx, kr, kx2, kr2, kx3, kr3, kx4, kr4 = jax.random.split(key, 8)

    ratio = 0.3

    # Primary shape from the module spec (lane-dense path: 4*16*16 = 1024 lanes).
    B, C, H, W = 2, 4, 16, 16
    x = jax.random.normal(kx, (B, C, H, W), dtype=jnp.float32)
    rand_per_batch = jax.random.uniform(kr, (B,), dtype=jnp.float32)
    out = jax.block_until_ready(dropconnect(x, rand_per_batch, ratio, training=True))
    ref = dropconnect_ref(x, rand_per_batch, ratio)
    assert out.shape == x.shape and out.dtype == x.dtype
    assert jnp.allclose(out, ref, atol=1e-6, rtol=1e-6)

    # Non-128-multiple per-sample size exercises the divisor-lane fallback (lanes=392).
    B2, C2, H2, W2 = 2, 8, 7, 7
    x2 = jax.random.normal(kx2, (B2, C2, H2, W2), dtype=jnp.float32)
    rand2 = jax.random.uniform(kr2, (B2,), dtype=jnp.float32)
    out2 = jax.block_until_ready(dropconnect(x2, rand2, ratio, training=True))
    assert jnp.allclose(out2, dropconnect_ref(x2, rand2, ratio), atol=1e-6, rtol=1e-6)

    # Moderately larger shape exercises the multi-block (split) grid path.
    B3, C3, H3, W3 = 8, 64, 32, 32
    x3 = jax.random.normal(kx3, (B3, C3, H3, W3), dtype=jnp.float32)
    rand3 = jax.random.uniform(kr3, (B3,), dtype=jnp.float32)
    out3 = jax.block_until_ready(dropconnect(x3, rand3, ratio, training=True))
    assert jnp.allclose(out3, dropconnect_ref(x3, rand3, ratio), atol=1e-6, rtol=1e-6)

    # bf16 path: multiply happens in bf16 (looser tolerance).
    x4 = jax.random.normal(kx4, (B, C, H, W), dtype=jnp.bfloat16)
    rand4 = jax.random.uniform(kr4, (B,), dtype=jnp.float32)
    out4 = jax.block_until_ready(dropconnect(x4, rand4, ratio, training=True))
    assert out4.dtype == jnp.bfloat16
    assert jnp.allclose(out4.astype(jnp.float32), dropconnect_ref(x4, rand4, ratio),
                        atol=2e-2, rtol=2e-2)

    # Eval mode is identity.
    assert dropconnect(x, rand_per_batch, ratio, training=False) is x

    print("KERNEL_OK")
</pallas_src>

<mosaic_0001>
module attributes {stable_mosaic.version = 11 : i64} {
  func.func @_dropconnect_kernel(%arg0: i32, %arg1: memref<2x1xf32, #tpu.memory_space<vmem>>, %arg2: memref<2x1024xf32, #tpu.memory_space<vmem>>, %arg3: memref<2x1024xf32, #tpu.memory_space<vmem>>) attributes {dimension_semantics = [#tpu.dimension_semantics<parallel>], iteration_bounds = array<i64: 1>, scalar_prefetch = 0 : i64, scratch_operands = 0 : i64, tpu.core_type = #tpu.core_type<tc>, window_params = [{transform_indices = @transform_0, window_bounds = array<i64: 2, 1>}, {transform_indices = @transform_1, window_bounds = array<i64: 2, 1024>}, {transform_indices = @transform_2, window_bounds = array<i64: 2, 1024>}]} {
    %c0 = arith.constant 0 : index
    %c0_0 = arith.constant 0 : index
    %0 = vector.load %arg2[%c0, %c0_0] : memref<2x1024xf32, #tpu.memory_space<vmem>>, vector<2x1024xf32>
    %c0_1 = arith.constant 0 : index
    %c0_2 = arith.constant 0 : index
    %1 = vector.load %arg1[%c0_1, %c0_2] : memref<2x1xf32, #tpu.memory_space<vmem>>, vector<2x1xf32>
    %2 = vector.broadcast %1 : vector<2x1xf32> to vector<2x1024xf32>
    %3 = arith.mulf %0, %2 : vector<2x1024xf32>
    %c0_3 = arith.constant 0 : index
    %c0_4 = arith.constant 0 : index
    %4 = vector.load %arg3[%c0_3, %c0_4] : memref<2x1024xf32, #tpu.memory_space<vmem>>, vector<2x1024xf32>
    tpu.vector_store %arg3[%c0_3, %c0_4], %3 {strides = array<i32>} : memref<2x1024xf32, #tpu.memory_space<vmem>>, vector<2x1024xf32>,
    return
  }
  func.func @transform_0(%arg0: i32) -> (i32, i32) {
    %c0_i32 = arith.constant 0 : i32
    %c0_i32_0 = arith.constant 0 : i32
    return %arg0, %c0_i32 : i32, i32
  }
  func.func @transform_1(%arg0: i32) -> (i32, i32) {
    %c0_i32 = arith.constant 0 : i32
    %c0_i32_0 = arith.constant 0 : i32
    return %arg0, %c0_i32 : i32, i32
  }
  func.func @transform_2(%arg0: i32) -> (i32, i32) {
    %c0_i32 = arith.constant 0 : i32
    %c0_i32_0 = arith.constant 0 : i32
    return %arg0, %c0_i32 : i32, i32
  }
}

</mosaic_0001>

<bundles_post_ra>
// kernel: tpu_custom_call.1
= control target key start
LH: loop header
LB: loop body
LE: loop exit
PB: predicated region body
PF: predicated region fallthrough
CT: control target
= control target key end

     0   :  { %7 = vsyncpa [#allocation3], 0  ;;  %s144_s0 = inlined_call_operand.vmem [shape: f32[2,1], index: 0, kind: input, shape index: {}]   ;;  %s145_s1 = inlined_call_operand.hbm [shape: f32[2,1024], index: 1, kind: input, shape index: {}]   ;;  %s146_s2 = inlined_call_operand.hbm [shape: f32[2,1024], index: 2, kind: output, shape index: {}]  }
   0x1   :  { %8 = vsyncpa [#allocation4], 0  ;;  %s16_s11 = sshll.u32 %s145_s1, 4  ;;  %s116_s12 = smov [#allocation2]   ;;  %s17_s11 = int_to_ptr.hbm [resolvable:$true] %s16_s11 }
   0x2   :  { %s18_s13 = sshll.u32 %s116_s12, 4  ;;  %s19_s13 = int_to_ptr.vmem [resolvable:$true] %s18_s13 }
   0x3   :  { %21 = dma.hbm_to_vmem [thread:$0]  %s17_s11, 256, %s19_s13, [#allocation3]  }
   0x4   :  { %112 = dma.done.wait [#allocation3], 256  }
   0x5   :  { %113 = vsyncadd [#allocation3], 4294967040  ;;  %v117_v0 = vmov 0   ;;  %v28_v1 = vld [vmem:[%s144_s0] sm:$0x3]  ;;  %v27_v7 = vld [vmem:[#allocation2 + $0x8] sm:$0xff] }
   0x6   :  { %63 = vset.pattern.permute.xlu0 %v117_v0  ;;  %v118_v2 = vmov 269488144   ;;  %v26_v6 = vld [vmem:[#allocation2] sm:$0xff]  ;;  %s119_s1 = smov [#allocation5]   ;;  %s49_s19 = sshll.u32 %s146_s2, 4  ;;  %s50_s19 = int_to_ptr.hbm [resolvable:$true] %s49_s19 }
   0x7   :  { %31 = vperm.xlu0 %63, %v28_v1   ;;  %v34_v3 = vunpack.c.l.s4 %v118_v2  ;;  %s47_s16 = sshll.u32 %s119_s1, 4  ;;  %s48_s16 = int_to_ptr.vmem [resolvable:$true] %s47_s16 }
   0x9   :  { %v35_v4 = vunpack.c.0.s8 %v34_v3 }
  0x79   :  { %v32_v5 = vpop.permute.xlu0 %31 }
  0x7a   :  { %v36_v8 = vperm.slane %v32_v5, %v35_v4 }
  0x7c   :  { %v38_v9 = vmul.f32 %v36_v8, %v26_v6  ;;  %v39_v10 = vmul.f32 %v36_v8, %v27_v7 }
  0x7e   :  { %40 = vst [vmem:[#allocation5] sm:$0xff] %v38_v9 }
  0x7f   :  { %41 = vst [vmem:[#allocation5 + $0x8] sm:$0xff] %v39_v10 }
  0x80   :  { %52 = dma.vmem_to_hbm [thread:$0]  %s48_s16, 256, %s50_s19, [#allocation4]  }
  0x81   :  { %114 = dma.done.wait [#allocation4], 256  }
  0x82   :  { %115 = vsyncadd [#allocation4], 4294967040 }
  0x83   :  { %57 = vsyncpa [#allocation3], 1 }
  0x84   :  { %58 = vsyncpa [#allocation4], 1 }

</bundles_post_ra>
